<compile_context>
chip_gen: v7x
topology: tpu7x:2x2x1
jax: 0.10.0
libtpu: 0.0.40
codegen_flags: <defaults>
</compile_context>

<pallas_src>
import functools

import jax
import jax.numpy as jnp
from jax import lax
from jax.experimental import pallas as pl
from jax.experimental.pallas import tpu as pltpu


def block_kernel(
    x_ref,                      # (1, T, C)  full sequence for this batch (K/V side)
    ln1_g_ref, ln1_b_ref,       # (1, C)  f32
    wq_ref, wk_ref, wv_ref,     # (C, C)  compute dtype
    wproj_ref, bproj_ref,       # (C, C) compute dtype, (1, C) f32
    ln2_g_ref, ln2_b_ref,       # (1, C)  f32
    w1_ref, b1_ref,             # (C, 4C) compute dtype, (1, 4C) f32
    w2_ref, b2_ref,             # (4C, C) compute dtype, (1, C) f32
    out_ref,                    # (1, TQ, C)
    sa_ref,                     # VMEM scratch (TQ, C) f32 — per-head outputs
    *, n_head: int,
):
    TQ = out_ref.shape[1]
    T = x_ref.shape[1]
    C = x_ref.shape[2]
    hs = C // n_head
    eps = jnp.float32(1e-5)
    cdt = wq_ref.dtype          # matmul operand dtype (f32 here, bf16 fast path)

    qi = pl.program_id(1)
    q0 = pl.multiple_of(qi * TQ, TQ)

    def layernorm(h, g_ref, b_ref):
        mean = jnp.mean(h, axis=-1, keepdims=True)
        d = h - mean
        var = jnp.mean(d * d, axis=-1, keepdims=True)       # biased, like PyTorch LN
        return d * lax.rsqrt(var + eps) * g_ref[0].astype(jnp.float32) \
            + b_ref[0].astype(jnp.float32)

    # ---------------- self-attention branch ----------------
    x_all = x_ref[0].astype(jnp.float32)                     # (T, C)  residual stream
    x_q = x_ref[0, pl.ds(q0, TQ), :].astype(jnp.float32)     # (TQ, C) query-tile residual

    xln_kv = layernorm(x_all, ln1_g_ref, ln1_b_ref).astype(cdt)   # (T, C)
    xln_q = layernorm(x_q, ln1_g_ref, ln1_b_ref).astype(cdt)      # (TQ, C)

    # fused full-width projections (one MXU-wide matmul per Q/K/V)
    scale = jnp.float32(C) ** jnp.float32(-0.5)   # scaled by n_embd, as in the reference
    q = jnp.dot(xln_q, wq_ref[...], preferred_element_type=jnp.float32) * scale  # (TQ, C)
    k = jnp.dot(xln_kv, wk_ref[...], preferred_element_type=jnp.float32)         # (T, C)
    v = jnp.dot(xln_kv, wv_ref[...], preferred_element_type=jnp.float32)         # (T, C)

    # causal mask for this query tile (absolute positions)
    row = q0 + lax.broadcasted_iota(jnp.int32, (TQ, T), 0)
    col = lax.broadcasted_iota(jnp.int32, (TQ, T), 1)
    causal = col <= row
    neg = jnp.float32(-1e30)    # large negative instead of -inf (NaN-safe masking)

    for h in range(n_head):
        sl = slice(h * hs, (h + 1) * hs)
        qh = q[:, sl].astype(cdt)                            # (TQ, hs)
        kh = k[:, sl].astype(cdt)                            # (T, hs)
        vh = v[:, sl].astype(cdt)                            # (T, hs)

        s = jnp.dot(qh, kh.T, preferred_element_type=jnp.float32)   # (TQ, T)
        s = jnp.where(causal, s, neg)
        s = s - jnp.max(s, axis=-1, keepdims=True)
        p = jnp.exp(s)
        p = p * pl.reciprocal(jnp.sum(p, axis=-1, keepdims=True), approx=True)
        # dropout(p): identity in eval mode
        sa_ref[:, sl] = jnp.dot(p.astype(cdt), vh, preferred_element_type=jnp.float32)

    sa = jnp.dot(sa_ref[...].astype(cdt), wproj_ref[...],
                 preferred_element_type=jnp.float32) + bproj_ref[0].astype(jnp.float32)
    # dropout(sa): identity in eval mode
    x1 = x_q + sa                                            # (TQ, C) f32

    # ---------------- feed-forward branch ----------------
    xln2 = layernorm(x1, ln2_g_ref, ln2_b_ref).astype(cdt)
    hdn = jnp.dot(xln2, w1_ref[...],
                  preferred_element_type=jnp.float32) + b1_ref[0].astype(jnp.float32)
    hdn = jnp.maximum(hdn, 0.0)
    ff = jnp.dot(hdn.astype(cdt), w2_ref[...],
                 preferred_element_type=jnp.float32) + b2_ref[0].astype(jnp.float32)
    # dropout(ff): identity in eval mode

    out_ref[0] = (x1 + ff).astype(out_ref.dtype)


def block_forward(x, params, n_head, *, compute_dtype=None, q_tile=None):
    B, T, C = x.shape
    H = 4 * C
    assert C % n_head == 0

    if compute_dtype is None:
        compute_dtype = params["wq"].dtype      # keep native dtype (bf16 -> MXU fast path)
    if q_tile is None:
        q_tile = 128 if (T % 128 == 0) else T   # (8,128)-friendly query tile
    assert T % q_tile == 0
    num_q = T // q_tile

    cast_w = lambda w: w.astype(compute_dtype)
    f32 = lambda a: a.astype(jnp.float32)
    full = lambda shape: pl.BlockSpec(shape, lambda b, qi, _s=shape: (0,) * len(_s))

    w_bytes = 12 * C * C * jnp.dtype(compute_dtype).itemsize
    cost = pl.CostEstimate(
        flops=int(B * (24 * T * C * C + 4 * T * T * C)),
        transcendentals=int(B * n_head * T * T),
        bytes_accessed=int(2 * B * T * C * x.dtype.itemsize + w_bytes),
    )

    kernel = functools.partial(block_kernel, n_head=n_head)
    return pl.pallas_call(
        kernel,
        out_shape=jax.ShapeDtypeStruct((B, T, C), x.dtype),
        grid_spec=pltpu.PrefetchScalarGridSpec(
            num_scalar_prefetch=0,
            grid=(B, num_q),
            in_specs=[
                pl.BlockSpec((1, T, C), lambda b, qi: (b, 0, 0)),   # x (full seq, K/V side)
                full((1, C)), full((1, C)),                          # ln1 gamma, beta
                full((C, C)), full((C, C)), full((C, C)),            # Wq, Wk, Wv
                full((C, C)), full((1, C)),                          # Wproj, bproj
                full((1, C)), full((1, C)),                          # ln2 gamma, beta
                full((C, H)), full((1, H)),                          # W1, b1
                full((H, C)), full((1, C)),                          # W2, b2
            ],
            out_specs=pl.BlockSpec((1, q_tile, C), lambda b, qi: (b, qi, 0)),
            scratch_shapes=[pltpu.VMEM((q_tile, C), jnp.float32)],
        ),
        compiler_params=pltpu.CompilerParams(
            dimension_semantics=("parallel", "parallel")),
        cost_estimate=cost,
    )(
        x,
        f32(params["ln1_g"]), f32(params["ln1_b"]),
        cast_w(params["wq"]), cast_w(params["wk"]), cast_w(params["wv"]),
        cast_w(params["wproj"]), f32(params["bproj"]),
        f32(params["ln2_g"]), f32(params["ln2_b"]),
        cast_w(params["w1"]), f32(params["b1"]),
        cast_w(params["w2"]), f32(params["b2"]),
    )


def init_params(key, n_embd, n_head):
    C, H = n_embd, 4 * n_embd
    ks = jax.random.split(key, 8)
    scale = 0.02
    return {
        "ln1_g": jnp.ones((1, C), jnp.float32),
        "ln1_b": jnp.zeros((1, C), jnp.float32),
        # per-head projection weights concatenated along output columns
        "wq": scale * jax.random.normal(ks[0], (C, C), jnp.float32),
        "wk": scale * jax.random.normal(ks[1], (C, C), jnp.float32),
        "wv": scale * jax.random.normal(ks[2], (C, C), jnp.float32),
        "wproj": scale * jax.random.normal(ks[3], (C, C), jnp.float32),
        "bproj": scale * jax.random.normal(ks[4], (1, C), jnp.float32),
        "ln2_g": jnp.ones((1, C), jnp.float32),
        "ln2_b": jnp.zeros((1, C), jnp.float32),
        "w1": scale * jax.random.normal(ks[5], (C, H), jnp.float32),
        "b1": jnp.zeros((1, H), jnp.float32),
        "w2": scale * jax.random.normal(ks[6], (H, C), jnp.float32),
        "b2": jnp.zeros((1, C), jnp.float32),
    }


def reference_block(x, p, n_head):
    """Pure-JAX reference mirroring the PyTorch forward (eval mode)."""
    B, T, C = x.shape
    hs = C // n_head

    def ln(h, g, b):
        m = jnp.mean(h, -1, keepdims=True)
        v = jnp.mean((h - m) ** 2, -1, keepdims=True)
        return (h - m) / jnp.sqrt(v + 1e-5) * g[0] + b[0]

    xln = ln(x, p["ln1_g"], p["ln1_b"])
    mask = jnp.tril(jnp.ones((T, T), bool))
    outs = []
    for h in range(n_head):
        sl = slice(h * hs, (h + 1) * hs)
        q = xln @ p["wq"][:, sl]
        k = xln @ p["wk"][:, sl]
        v = xln @ p["wv"][:, sl]
        wei = (q @ jnp.swapaxes(k, -1, -2)) * C ** -0.5
        wei = jnp.where(mask, wei, -jnp.inf)
        wei = jax.nn.softmax(wei, axis=-1)
        outs.append(wei @ v)
    sa = jnp.concatenate(outs, -1) @ p["wproj"] + p["bproj"][0]
    x1 = x + sa
    xln2 = ln(x1, p["ln2_g"], p["ln2_b"])
    ff = jnp.maximum(xln2 @ p["w1"] + p["b1"][0], 0.0) @ p["w2"] + p["b2"][0]
    return x1 + ff


if __name__ == "__main__":
    B, T, C, n_head = 2, 8, 32, 4          # block_size=8, n_embd=32, n_head=4
    key = jax.random.PRNGKey(0)
    kx, kp = jax.random.split(key)
    x = jax.random.normal(kx, (B, T, C), jnp.float32)
    params = init_params(kp, C, n_head)

    out = jax.block_until_ready(block_forward(x, params, n_head))

    ref = reference_block(x, params, n_head)
    assert out.shape == (B, T, C)
    # tolerance covers the approx (EUP) reciprocal in the softmax normalization
    assert jnp.allclose(out, ref, atol=1e-3, rtol=1e-3), "mismatch vs reference"
    print("KERNEL_OK")
</pallas_src>

<mosaic_0001>
module attributes {stable_mosaic.version = 11 : i64} {
  func.func @block_kernel(%arg0: i32, %arg1: i32, %arg2: memref<1x8x32xf32, #tpu.memory_space<vmem>>, %arg3: memref<1x32xf32, #tpu.memory_space<vmem>>, %arg4: memref<1x32xf32, #tpu.memory_space<vmem>>, %arg5: memref<32x32xf32, #tpu.memory_space<vmem>>, %arg6: memref<32x32xf32, #tpu.memory_space<vmem>>, %arg7: memref<32x32xf32, #tpu.memory_space<vmem>>, %arg8: memref<32x32xf32, #tpu.memory_space<vmem>>, %arg9: memref<1x32xf32, #tpu.memory_space<vmem>>, %arg10: memref<1x32xf32, #tpu.memory_space<vmem>>, %arg11: memref<1x32xf32, #tpu.memory_space<vmem>>, %arg12: memref<32x128xf32, #tpu.memory_space<vmem>>, %arg13: memref<1x128xf32, #tpu.memory_space<vmem>>, %arg14: memref<128x32xf32, #tpu.memory_space<vmem>>, %arg15: memref<1x32xf32, #tpu.memory_space<vmem>>, %arg16: memref<1x8x32xf32, #tpu.memory_space<vmem>>, %arg17: memref<8x32xf32, #tpu.memory_space<vmem>>) attributes {dimension_semantics = [#tpu.dimension_semantics<parallel>, #tpu.dimension_semantics<parallel>], iteration_bounds = array<i64: 2, 1>, scalar_prefetch = 0 : i64, scratch_operands = 1 : i64, tpu.core_type = #tpu.core_type<tc>, window_params = [{transform_indices = @transform_0, window_bounds = array<i64: 1, 8, 32>}, {pipeline_mode = #tpu.pipeline_mode<synchronous>, transform_indices = @transform_1, window_bounds = array<i64: 1, 32>}, {pipeline_mode = #tpu.pipeline_mode<synchronous>, transform_indices = @transform_2, window_bounds = array<i64: 1, 32>}, {pipeline_mode = #tpu.pipeline_mode<synchronous>, transform_indices = @transform_3, window_bounds = array<i64: 32, 32>}, {pipeline_mode = #tpu.pipeline_mode<synchronous>, transform_indices = @transform_4, window_bounds = array<i64: 32, 32>}, {pipeline_mode = #tpu.pipeline_mode<synchronous>, transform_indices = @transform_5, window_bounds = array<i64: 32, 32>}, {pipeline_mode = #tpu.pipeline_mode<synchronous>, transform_indices = @transform_6, window_bounds = array<i64: 32, 32>}, {pipeline_mode = #tpu.pipeline_mode<synchronous>, transform_indices = @transform_7, window_bounds = array<i64: 1, 32>}, {pipeline_mode = #tpu.pipeline_mode<synchronous>, transform_indices = @transform_8, window_bounds = array<i64: 1, 32>}, {pipeline_mode = #tpu.pipeline_mode<synchronous>, transform_indices = @transform_9, window_bounds = array<i64: 1, 32>}, {pipeline_mode = #tpu.pipeline_mode<synchronous>, transform_indices = @transform_10, window_bounds = array<i64: 32, 128>}, {pipeline_mode = #tpu.pipeline_mode<synchronous>, transform_indices = @transform_11, window_bounds = array<i64: 1, 128>}, {pipeline_mode = #tpu.pipeline_mode<synchronous>, transform_indices = @transform_12, window_bounds = array<i64: 128, 32>}, {pipeline_mode = #tpu.pipeline_mode<synchronous>, transform_indices = @transform_13, window_bounds = array<i64: 1, 32>}, {transform_indices = @transform_14, window_bounds = array<i64: 1, 8, 32>}]} {
    %c8_i32 = arith.constant 8 : i32
    %0 = arith.muli %arg1, %c8_i32 : i32
    %1 = tpu.assume_multiple %0, 8 : i32
    %c0 = arith.constant 0 : index
    %c0_0 = arith.constant 0 : index
    %c0_1 = arith.constant 0 : index
    %2 = vector.load %arg2[%c0, %c0_0, %c0_1] : memref<1x8x32xf32, #tpu.memory_space<vmem>>, vector<1x8x32xf32>
    %3 = vector.shape_cast %2 : vector<1x8x32xf32> to vector<8x32xf32>
    %c0_2 = arith.constant 0 : index
    %4 = arith.index_cast %1 : i32 to index
    %c0_3 = arith.constant 0 : index
    %5 = vector.load %arg2[%c0_2, %4, %c0_3] : memref<1x8x32xf32, #tpu.memory_space<vmem>>, vector<1x8x32xf32>
    %6 = vector.shape_cast %5 : vector<1x8x32xf32> to vector<8x32xf32>
    %cst = arith.constant dense<0.000000e+00> : vector<8xf32>
    %7 = vector.multi_reduction <add>, %3, %cst [1] : vector<8x32xf32> to vector<8xf32>
    %8 = vector.shape_cast %7 : vector<8xf32> to vector<8x1xf32>
    %cst_4 = arith.constant 3.200000e+01 : f32
    %9 = vector.broadcast %cst_4 : f32 to vector<8x1xf32>
    %10 = arith.divf %8, %9 : vector<8x1xf32>
    %11 = vector.broadcast %10 : vector<8x1xf32> to vector<8x32xf32>
    %12 = arith.subf %3, %11 : vector<8x32xf32>
    %13 = arith.mulf %12, %12 : vector<8x32xf32>
    %cst_5 = arith.constant dense<0.000000e+00> : vector<8xf32>
    %14 = vector.multi_reduction <add>, %13, %cst_5 [1] : vector<8x32xf32> to vector<8xf32>
    %15 = vector.shape_cast %14 : vector<8xf32> to vector<8x1xf32>
    %cst_6 = arith.constant 3.200000e+01 : f32
    %16 = vector.broadcast %cst_6 : f32 to vector<8x1xf32>
    %17 = arith.divf %15, %16 : vector<8x1xf32>
    %cst_7 = arith.constant 9.99999974E-6 : f32
    %18 = vector.broadcast %cst_7 : f32 to vector<8x1xf32>
    %19 = arith.addf %17, %18 : vector<8x1xf32>
    %20 = math.rsqrt %19 : vector<8x1xf32>
    %21 = vector.broadcast %20 : vector<8x1xf32> to vector<8x32xf32>
    %22 = arith.mulf %12, %21 : vector<8x32xf32>
    %c0_8 = arith.constant 0 : index
    %c0_9 = arith.constant 0 : index
    %23 = vector.load %arg3[%c0_8, %c0_9] : memref<1x32xf32, #tpu.memory_space<vmem>>, vector<1x32xf32>
    %24 = vector.shape_cast %23 : vector<1x32xf32> to vector<32xf32>
    %25 = vector.shape_cast %24 : vector<32xf32> to vector<1x32xf32>
    %26 = vector.broadcast %25 : vector<1x32xf32> to vector<8x32xf32>
    %27 = arith.mulf %22, %26 : vector<8x32xf32>
    %c0_10 = arith.constant 0 : index
    %c0_11 = arith.constant 0 : index
    %28 = vector.load %arg4[%c0_10, %c0_11] : memref<1x32xf32, #tpu.memory_space<vmem>>, vector<1x32xf32>
    %29 = vector.shape_cast %28 : vector<1x32xf32> to vector<32xf32>
    %30 = vector.shape_cast %29 : vector<32xf32> to vector<1x32xf32>
    %31 = vector.broadcast %30 : vector<1x32xf32> to vector<8x32xf32>
    %32 = arith.addf %27, %31 : vector<8x32xf32>
    %cst_12 = arith.constant dense<0.000000e+00> : vector<8xf32>
    %33 = vector.multi_reduction <add>, %6, %cst_12 [1] : vector<8x32xf32> to vector<8xf32>
    %34 = vector.shape_cast %33 : vector<8xf32> to vector<8x1xf32>
    %cst_13 = arith.constant 3.200000e+01 : f32
    %35 = vector.broadcast %cst_13 : f32 to vector<8x1xf32>
    %36 = arith.divf %34, %35 : vector<8x1xf32>
    %37 = vector.broadcast %36 : vector<8x1xf32> to vector<8x32xf32>
    %38 = arith.subf %6, %37 : vector<8x32xf32>
    %39 = arith.mulf %38, %38 : vector<8x32xf32>
    %cst_14 = arith.constant dense<0.000000e+00> : vector<8xf32>
    %40 = vector.multi_reduction <add>, %39, %cst_14 [1] : vector<8x32xf32> to vector<8xf32>
    %41 = vector.shape_cast %40 : vector<8xf32> to vector<8x1xf32>
    %cst_15 = arith.constant 3.200000e+01 : f32
    %42 = vector.broadcast %cst_15 : f32 to vector<8x1xf32>
    %43 = arith.divf %41, %42 : vector<8x1xf32>
    %cst_16 = arith.constant 9.99999974E-6 : f32
    %44 = vector.broadcast %cst_16 : f32 to vector<8x1xf32>
    %45 = arith.addf %43, %44 : vector<8x1xf32>
    %46 = math.rsqrt %45 : vector<8x1xf32>
    %47 = vector.broadcast %46 : vector<8x1xf32> to vector<8x32xf32>
    %48 = arith.mulf %38, %47 : vector<8x32xf32>
    %c0_17 = arith.constant 0 : index
    %c0_18 = arith.constant 0 : index
    %49 = vector.load %arg3[%c0_17, %c0_18] : memref<1x32xf32, #tpu.memory_space<vmem>>, vector<1x32xf32>
    %50 = vector.shape_cast %49 : vector<1x32xf32> to vector<32xf32>
    %51 = vector.shape_cast %50 : vector<32xf32> to vector<1x32xf32>
    %52 = vector.broadcast %51 : vector<1x32xf32> to vector<8x32xf32>
    %53 = arith.mulf %48, %52 : vector<8x32xf32>
    %c0_19 = arith.constant 0 : index
    %c0_20 = arith.constant 0 : index
    %54 = vector.load %arg4[%c0_19, %c0_20] : memref<1x32xf32, #tpu.memory_space<vmem>>, vector<1x32xf32>
    %55 = vector.shape_cast %54 : vector<1x32xf32> to vector<32xf32>
    %56 = vector.shape_cast %55 : vector<32xf32> to vector<1x32xf32>
    %57 = vector.broadcast %56 : vector<1x32xf32> to vector<8x32xf32>
    %58 = arith.addf %53, %57 : vector<8x32xf32>
    %cst_21 = arith.constant 3.200000e+01 : f32
    %cst_22 = arith.constant -5.000000e-01 : f32
    %59 = math.powf %cst_21, %cst_22 : f32
    %c0_23 = arith.constant 0 : index
    %c0_24 = arith.constant 0 : index
    %60 = vector.load %arg5[%c0_23, %c0_24] : memref<32x32xf32, #tpu.memory_space<vmem>>, vector<32x32xf32>
    %cst_25 = arith.constant dense<0.000000e+00> : vector<8x32xf32>
    %61 = tpu.matmul %58, %60, %cst_25 {dimension_numbers = #tpu.dot_dimension_numbers<[1], [0], [0], [1], [0, 0, 1, 1], [], []>} : vector<8x32xf32>, vector<32x32xf32>, vector<8x32xf32> -> vector<8x32xf32>
    %62 = vector.broadcast %59 : f32 to vector<8x32xf32>
    %63 = arith.mulf %61, %62 : vector<8x32xf32>
    %c0_26 = arith.constant 0 : index
    %c0_27 = arith.constant 0 : index
    %64 = vector.load %arg6[%c0_26, %c0_27] : memref<32x32xf32, #tpu.memory_space<vmem>>, vector<32x32xf32>
    %cst_28 = arith.constant dense<0.000000e+00> : vector<8x32xf32>
    %65 = tpu.matmul %32, %64, %cst_28 {dimension_numbers = #tpu.dot_dimension_numbers<[1], [0], [0], [1], [0, 0, 1, 1], [], []>} : vector<8x32xf32>, vector<32x32xf32>, vector<8x32xf32> -> vector<8x32xf32>
    %c0_29 = arith.constant 0 : index
    %c0_30 = arith.constant 0 : index
    %66 = vector.load %arg7[%c0_29, %c0_30] : memref<32x32xf32, #tpu.memory_space<vmem>>, vector<32x32xf32>
    %cst_31 = arith.constant dense<0.000000e+00> : vector<8x32xf32>
    %67 = tpu.matmul %32, %66, %cst_31 {dimension_numbers = #tpu.dot_dimension_numbers<[1], [0], [0], [1], [0, 0, 1, 1], [], []>} : vector<8x32xf32>, vector<32x32xf32>, vector<8x32xf32> -> vector<8x32xf32>
    %68 = tpu.iota {dimensions = array<i32: 0>} : vector<8x8xi32>
    %69 = vector.broadcast %1 : i32 to vector<8x8xi32>
    %70 = arith.addi %69, %68 : vector<8x8xi32>
    %71 = tpu.iota {dimensions = array<i32: 1>} : vector<8x8xi32>
    %72 = arith.cmpi sle, %71, %70 : vector<8x8xi32>
    %73 = vector.extract_strided_slice %63 {offsets = [0, 0], sizes = [8, 8], strides = [1, 1]} : vector<8x32xf32> to vector<8x8xf32>
    %74 = vector.extract_strided_slice %65 {offsets = [0, 0], sizes = [8, 8], strides = [1, 1]} : vector<8x32xf32> to vector<8x8xf32>
    %75 = vector.extract_strided_slice %67 {offsets = [0, 0], sizes = [8, 8], strides = [1, 1]} : vector<8x32xf32> to vector<8x8xf32>
    %76 = tpu.transpose %74, [1, 0] : vector<8x8xf32> -> vector<8x8xf32>
    %cst_32 = arith.constant dense<0.000000e+00> : vector<8x8xf32>
    %77 = tpu.matmul %73, %76, %cst_32 {dimension_numbers = #tpu.dot_dimension_numbers<[1], [0], [0], [1], [0, 0, 1, 1], [], []>} : vector<8x8xf32>, vector<8x8xf32>, vector<8x8xf32> -> vector<8x8xf32>
    %cst_33 = arith.constant -1.000000e+30 : f32
    %78 = vector.broadcast %cst_33 : f32 to vector<8x8xf32>
    %79 = arith.select %72, %77, %78 : vector<8x8xi1>, vector<8x8xf32>
    %cst_34 = arith.constant dense<0xFF800000> : vector<8xf32>
    %80 = vector.multi_reduction <maximumf>, %79, %cst_34 [1] : vector<8x8xf32> to vector<8xf32>
    %81 = vector.shape_cast %80 : vector<8xf32> to vector<8x1xf32>
    %82 = vector.broadcast %81 : vector<8x1xf32> to vector<8x8xf32>
    %83 = arith.subf %79, %82 : vector<8x8xf32>
    %84 = math.exp %83 : vector<8x8xf32>
    %cst_35 = arith.constant dense<0.000000e+00> : vector<8xf32>
    %85 = vector.multi_reduction <add>, %84, %cst_35 [1] : vector<8x8xf32> to vector<8xf32>
    %86 = vector.shape_cast %85 : vector<8xf32> to vector<8x1xf32>
    %87 = tpu.reciprocal %86 {approx = true} : vector<8x1xf32> -> vector<8x1xf32>
    %88 = vector.broadcast %87 : vector<8x1xf32> to vector<8x8xf32>
    %89 = arith.mulf %84, %88 : vector<8x8xf32>
    %cst_36 = arith.constant dense<0.000000e+00> : vector<8x8xf32>
    %90 = tpu.matmul %89, %75, %cst_36 {dimension_numbers = #tpu.dot_dimension_numbers<[1], [0], [0], [1], [0, 0, 1, 1], [], []>} : vector<8x8xf32>, vector<8x8xf32>, vector<8x8xf32> -> vector<8x8xf32>
    %c0_37 = arith.constant 0 : index
    %c0_38 = arith.constant 0 : index
    %91 = vector.load %arg17[%c0_37, %c0_38] : memref<8x32xf32, #tpu.memory_space<vmem>>, vector<8x8xf32>
    tpu.vector_store %arg17[%c0_37, %c0_38], %90 {strides = array<i32>} : memref<8x32xf32, #tpu.memory_space<vmem>>, vector<8x8xf32>,
    %92 = vector.extract_strided_slice %63 {offsets = [0, 8], sizes = [8, 8], strides = [1, 1]} : vector<8x32xf32> to vector<8x8xf32>
    %93 = vector.extract_strided_slice %65 {offsets = [0, 8], sizes = [8, 8], strides = [1, 1]} : vector<8x32xf32> to vector<8x8xf32>
    %94 = vector.extract_strided_slice %67 {offsets = [0, 8], sizes = [8, 8], strides = [1, 1]} : vector<8x32xf32> to vector<8x8xf32>
    %95 = tpu.transpose %93, [1, 0] : vector<8x8xf32> -> vector<8x8xf32>
    %cst_39 = arith.constant dense<0.000000e+00> : vector<8x8xf32>
    %96 = tpu.matmul %92, %95, %cst_39 {dimension_numbers = #tpu.dot_dimension_numbers<[1], [0], [0], [1], [0, 0, 1, 1], [], []>} : vector<8x8xf32>, vector<8x8xf32>, vector<8x8xf32> -> vector<8x8xf32>
    %cst_40 = arith.constant -1.000000e+30 : f32
    %97 = vector.broadcast %cst_40 : f32 to vector<8x8xf32>
    %98 = arith.select %72, %96, %97 : vector<8x8xi1>, vector<8x8xf32>
    %cst_41 = arith.constant dense<0xFF800000> : vector<8xf32>
    %99 = vector.multi_reduction <maximumf>, %98, %cst_41 [1] : vector<8x8xf32> to vector<8xf32>
    %100 = vector.shape_cast %99 : vector<8xf32> to vector<8x1xf32>
    %101 = vector.broadcast %100 : vector<8x1xf32> to vector<8x8xf32>
    %102 = arith.subf %98, %101 : vector<8x8xf32>
    %103 = math.exp %102 : vector<8x8xf32>
    %cst_42 = arith.constant dense<0.000000e+00> : vector<8xf32>
    %104 = vector.multi_reduction <add>, %103, %cst_42 [1] : vector<8x8xf32> to vector<8xf32>
    %105 = vector.shape_cast %104 : vector<8xf32> to vector<8x1xf32>
    %106 = tpu.reciprocal %105 {approx = true} : vector<8x1xf32> -> vector<8x1xf32>
    %107 = vector.broadcast %106 : vector<8x1xf32> to vector<8x8xf32>
    %108 = arith.mulf %103, %107 : vector<8x8xf32>
    %cst_43 = arith.constant dense<0.000000e+00> : vector<8x8xf32>
    %109 = tpu.matmul %108, %94, %cst_43 {dimension_numbers = #tpu.dot_dimension_numbers<[1], [0], [0], [1], [0, 0, 1, 1], [], []>} : vector<8x8xf32>, vector<8x8xf32>, vector<8x8xf32> -> vector<8x8xf32>
    %c0_44 = arith.constant 0 : index
    %c8 = arith.constant 8 : index
    %110 = vector.load %arg17[%c0_44, %c8] : memref<8x32xf32, #tpu.memory_space<vmem>>, vector<8x8xf32>
    tpu.vector_store %arg17[%c0_44, %c8], %109 {strides = array<i32>} : memref<8x32xf32, #tpu.memory_space<vmem>>, vector<8x8xf32>,
    %111 = vector.extract_strided_slice %63 {offsets = [0, 16], sizes = [8, 8], strides = [1, 1]} : vector<8x32xf32> to vector<8x8xf32>
    %112 = vector.extract_strided_slice %65 {offsets = [0, 16], sizes = [8, 8], strides = [1, 1]} : vector<8x32xf32> to vector<8x8xf32>
    %113 = vector.extract_strided_slice %67 {offsets = [0, 16], sizes = [8, 8], strides = [1, 1]} : vector<8x32xf32> to vector<8x8xf32>
    %114 = tpu.transpose %112, [1, 0] : vector<8x8xf32> -> vector<8x8xf32>
    %cst_45 = arith.constant dense<0.000000e+00> : vector<8x8xf32>
    %115 = tpu.matmul %111, %114, %cst_45 {dimension_numbers = #tpu.dot_dimension_numbers<[1], [0], [0], [1], [0, 0, 1, 1], [], []>} : vector<8x8xf32>, vector<8x8xf32>, vector<8x8xf32> -> vector<8x8xf32>
    %cst_46 = arith.constant -1.000000e+30 : f32
    %116 = vector.broadcast %cst_46 : f32 to vector<8x8xf32>
    %117 = arith.select %72, %115, %116 : vector<8x8xi1>, vector<8x8xf32>
    %cst_47 = arith.constant dense<0xFF800000> : vector<8xf32>
    %118 = vector.multi_reduction <maximumf>, %117, %cst_47 [1] : vector<8x8xf32> to vector<8xf32>
    %119 = vector.shape_cast %118 : vector<8xf32> to vector<8x1xf32>
    %120 = vector.broadcast %119 : vector<8x1xf32> to vector<8x8xf32>
    %121 = arith.subf %117, %120 : vector<8x8xf32>
    %122 = math.exp %121 : vector<8x8xf32>
    %cst_48 = arith.constant dense<0.000000e+00> : vector<8xf32>
    %123 = vector.multi_reduction <add>, %122, %cst_48 [1] : vector<8x8xf32> to vector<8xf32>
    %124 = vector.shape_cast %123 : vector<8xf32> to vector<8x1xf32>
    %125 = tpu.reciprocal %124 {approx = true} : vector<8x1xf32> -> vector<8x1xf32>
    %126 = vector.broadcast %125 : vector<8x1xf32> to vector<8x8xf32>
    %127 = arith.mulf %122, %126 : vector<8x8xf32>
    %cst_49 = arith.constant dense<0.000000e+00> : vector<8x8xf32>
    %128 = tpu.matmul %127, %113, %cst_49 {dimension_numbers = #tpu.dot_dimension_numbers<[1], [0], [0], [1], [0, 0, 1, 1], [], []>} : vector<8x8xf32>, vector<8x8xf32>, vector<8x8xf32> -> vector<8x8xf32>
    %c0_50 = arith.constant 0 : index
    %c16 = arith.constant 16 : index
    %129 = vector.load %arg17[%c0_50, %c16] : memref<8x32xf32, #tpu.memory_space<vmem>>, vector<8x8xf32>
    tpu.vector_store %arg17[%c0_50, %c16], %128 {strides = array<i32>} : memref<8x32xf32, #tpu.memory_space<vmem>>, vector<8x8xf32>,
    %130 = vector.extract_strided_slice %63 {offsets = [0, 24], sizes = [8, 8], strides = [1, 1]} : vector<8x32xf32> to vector<8x8xf32>
    %131 = vector.extract_strided_slice %65 {offsets = [0, 24], sizes = [8, 8], strides = [1, 1]} : vector<8x32xf32> to vector<8x8xf32>
    %132 = vector.extract_strided_slice %67 {offsets = [0, 24], sizes = [8, 8], strides = [1, 1]} : vector<8x32xf32> to vector<8x8xf32>
    %133 = tpu.transpose %131, [1, 0] : vector<8x8xf32> -> vector<8x8xf32>
    %cst_51 = arith.constant dense<0.000000e+00> : vector<8x8xf32>
    %134 = tpu.matmul %130, %133, %cst_51 {dimension_numbers = #tpu.dot_dimension_numbers<[1], [0], [0], [1], [0, 0, 1, 1], [], []>} : vector<8x8xf32>, vector<8x8xf32>, vector<8x8xf32> -> vector<8x8xf32>
    %cst_52 = arith.constant -1.000000e+30 : f32
    %135 = vector.broadcast %cst_52 : f32 to vector<8x8xf32>
    %136 = arith.select %72, %134, %135 : vector<8x8xi1>, vector<8x8xf32>
    %cst_53 = arith.constant dense<0xFF800000> : vector<8xf32>
    %137 = vector.multi_reduction <maximumf>, %136, %cst_53 [1] : vector<8x8xf32> to vector<8xf32>
    %138 = vector.shape_cast %137 : vector<8xf32> to vector<8x1xf32>
    %139 = vector.broadcast %138 : vector<8x1xf32> to vector<8x8xf32>
    %140 = arith.subf %136, %139 : vector<8x8xf32>
    %141 = math.exp %140 : vector<8x8xf32>
    %cst_54 = arith.constant dense<0.000000e+00> : vector<8xf32>
    %142 = vector.multi_reduction <add>, %141, %cst_54 [1] : vector<8x8xf32> to vector<8xf32>
    %143 = vector.shape_cast %142 : vector<8xf32> to vector<8x1xf32>
    %144 = tpu.reciprocal %143 {approx = true} : vector<8x1xf32> -> vector<8x1xf32>
    %145 = vector.broadcast %144 : vector<8x1xf32> to vector<8x8xf32>
    %146 = arith.mulf %141, %145 : vector<8x8xf32>
    %cst_55 = arith.constant dense<0.000000e+00> : vector<8x8xf32>
    %147 = tpu.matmul %146, %132, %cst_55 {dimension_numbers = #tpu.dot_dimension_numbers<[1], [0], [0], [1], [0, 0, 1, 1], [], []>} : vector<8x8xf32>, vector<8x8xf32>, vector<8x8xf32> -> vector<8x8xf32>
    %c0_56 = arith.constant 0 : index
    %c24 = arith.constant 24 : index
    %148 = vector.load %arg17[%c0_56, %c24] : memref<8x32xf32, #tpu.memory_space<vmem>>, vector<8x8xf32>
    tpu.vector_store %arg17[%c0_56, %c24], %147 {strides = array<i32>} : memref<8x32xf32, #tpu.memory_space<vmem>>, vector<8x8xf32>,
    %c0_57 = arith.constant 0 : index
    %c0_58 = arith.constant 0 : index
    %149 = vector.load %arg17[%c0_57, %c0_58] : memref<8x32xf32, #tpu.memory_space<vmem>>, vector<8x32xf32>
    %c0_59 = arith.constant 0 : index
    %c0_60 = arith.constant 0 : index
    %150 = vector.load %arg8[%c0_59, %c0_60] : memref<32x32xf32, #tpu.memory_space<vmem>>, vector<32x32xf32>
    %cst_61 = arith.constant dense<0.000000e+00> : vector<8x32xf32>
    %151 = tpu.matmul %149, %150, %cst_61 {dimension_numbers = #tpu.dot_dimension_numbers<[1], [0], [0], [1], [0, 0, 1, 1], [], []>} : vector<8x32xf32>, vector<32x32xf32>, vector<8x32xf32> -> vector<8x32xf32>
    %c0_62 = arith.constant 0 : index
    %c0_63 = arith.constant 0 : index
    %152 = vector.load %arg9[%c0_62, %c0_63] : memref<1x32xf32, #tpu.memory_space<vmem>>, vector<1x32xf32>
    %153 = vector.shape_cast %152 : vector<1x32xf32> to vector<32xf32>
    %154 = vector.shape_cast %153 : vector<32xf32> to vector<1x32xf32>
    %155 = vector.broadcast %154 : vector<1x32xf32> to vector<8x32xf32>
    %156 = arith.addf %151, %155 : vector<8x32xf32>
    %157 = arith.addf %6, %156 : vector<8x32xf32>
    %cst_64 = arith.constant dense<0.000000e+00> : vector<8xf32>
    %158 = vector.multi_reduction <add>, %157, %cst_64 [1] : vector<8x32xf32> to vector<8xf32>
    %159 = vector.shape_cast %158 : vector<8xf32> to vector<8x1xf32>
    %cst_65 = arith.constant 3.200000e+01 : f32
    %160 = vector.broadcast %cst_65 : f32 to vector<8x1xf32>
    %161 = arith.divf %159, %160 : vector<8x1xf32>
    %162 = vector.broadcast %161 : vector<8x1xf32> to vector<8x32xf32>
    %163 = arith.subf %157, %162 : vector<8x32xf32>
    %164 = arith.mulf %163, %163 : vector<8x32xf32>
    %cst_66 = arith.constant dense<0.000000e+00> : vector<8xf32>
    %165 = vector.multi_reduction <add>, %164, %cst_66 [1] : vector<8x32xf32> to vector<8xf32>
    %166 = vector.shape_cast %165 : vector<8xf32> to vector<8x1xf32>
    %cst_67 = arith.constant 3.200000e+01 : f32
    %167 = vector.broadcast %cst_67 : f32 to vector<8x1xf32>
    %168 = arith.divf %166, %167 : vector<8x1xf32>
    %cst_68 = arith.constant 9.99999974E-6 : f32
    %169 = vector.broadcast %cst_68 : f32 to vector<8x1xf32>
    %170 = arith.addf %168, %169 : vector<8x1xf32>
    %171 = math.rsqrt %170 : vector<8x1xf32>
    %172 = vector.broadcast %171 : vector<8x1xf32> to vector<8x32xf32>
    %173 = arith.mulf %163, %172 : vector<8x32xf32>
    %c0_69 = arith.constant 0 : index
    %c0_70 = arith.constant 0 : index
    %174 = vector.load %arg10[%c0_69, %c0_70] : memref<1x32xf32, #tpu.memory_space<vmem>>, vector<1x32xf32>
    %175 = vector.shape_cast %174 : vector<1x32xf32> to vector<32xf32>
    %176 = vector.shape_cast %175 : vector<32xf32> to vector<1x32xf32>
    %177 = vector.broadcast %176 : vector<1x32xf32> to vector<8x32xf32>
    %178 = arith.mulf %173, %177 : vector<8x32xf32>
    %c0_71 = arith.constant 0 : index
    %c0_72 = arith.constant 0 : index
    %179 = vector.load %arg11[%c0_71, %c0_72] : memref<1x32xf32, #tpu.memory_space<vmem>>, vector<1x32xf32>
    %180 = vector.shape_cast %179 : vector<1x32xf32> to vector<32xf32>
    %181 = vector.shape_cast %180 : vector<32xf32> to vector<1x32xf32>
    %182 = vector.broadcast %181 : vector<1x32xf32> to vector<8x32xf32>
    %183 = arith.addf %178, %182 : vector<8x32xf32>
    %c0_73 = arith.constant 0 : index
    %c0_74 = arith.constant 0 : index
    %184 = vector.load %arg12[%c0_73, %c0_74] : memref<32x128xf32, #tpu.memory_space<vmem>>, vector<32x128xf32>
    %cst_75 = arith.constant dense<0.000000e+00> : vector<8x128xf32>
    %185 = tpu.matmul %183, %184, %cst_75 {dimension_numbers = #tpu.dot_dimension_numbers<[1], [0], [0], [1], [0, 0, 1, 1], [], []>} : vector<8x32xf32>, vector<32x128xf32>, vector<8x128xf32> -> vector<8x128xf32>
    %c0_76 = arith.constant 0 : index
    %c0_77 = arith.constant 0 : index
    %186 = vector.load %arg13[%c0_76, %c0_77] : memref<1x128xf32, #tpu.memory_space<vmem>>, vector<1x128xf32>
    %187 = vector.shape_cast %186 : vector<1x128xf32> to vector<128xf32>
    %188 = vector.shape_cast %187 : vector<128xf32> to vector<1x128xf32>
    %189 = vector.broadcast %188 : vector<1x128xf32> to vector<8x128xf32>
    %190 = arith.addf %185, %189 : vector<8x128xf32>
    %cst_78 = arith.constant 0.000000e+00 : f32
    %191 = vector.broadcast %cst_78 : f32 to vector<8x128xf32>
    %192 = arith.maximumf %190, %191 : vector<8x128xf32>
    %c0_79 = arith.constant 0 : index
    %c0_80 = arith.constant 0 : index
    %193 = vector.load %arg14[%c0_79, %c0_80] : memref<128x32xf32, #tpu.memory_space<vmem>>, vector<128x32xf32>
    %cst_81 = arith.constant dense<0.000000e+00> : vector<8x32xf32>
    %194 = tpu.matmul %192, %193, %cst_81 {dimension_numbers = #tpu.dot_dimension_numbers<[1], [0], [0], [1], [0, 0, 1, 1], [], []>} : vector<8x128xf32>, vector<128x32xf32>, vector<8x32xf32> -> vector<8x32xf32>
    %c0_82 = arith.constant 0 : index
    %c0_83 = arith.constant 0 : index
    %195 = vector.load %arg15[%c0_82, %c0_83] : memref<1x32xf32, #tpu.memory_space<vmem>>, vector<1x32xf32>
    %196 = vector.shape_cast %195 : vector<1x32xf32> to vector<32xf32>
    %197 = vector.shape_cast %196 : vector<32xf32> to vector<1x32xf32>
    %198 = vector.broadcast %197 : vector<1x32xf32> to vector<8x32xf32>
    %199 = arith.addf %194, %198 : vector<8x32xf32>
    %200 = arith.addf %157, %199 : vector<8x32xf32>
    %c0_84 = arith.constant 0 : index
    %c0_85 = arith.constant 0 : index
    %c0_86 = arith.constant 0 : index
    %201 = vector.load %arg16[%c0_84, %c0_85, %c0_86] : memref<1x8x32xf32, #tpu.memory_space<vmem>>, vector<1x8x32xf32>
    %202 = vector.shape_cast %201 : vector<1x8x32xf32> to vector<8x32xf32>
    %203 = vector.shape_cast %200 : vector<8x32xf32> to vector<1x8x32xf32>
    tpu.vector_store %arg16[%c0_84, %c0_85, %c0_86], %203 {strides = array<i32>} : memref<1x8x32xf32, #tpu.memory_space<vmem>>, vector<1x8x32xf32>,
    return
  }
  func.func @transform_0(%arg0: i32, %arg1: i32) -> (i32, i32, i32) {
    %c0_i32 = arith.constant 0 : i32
    %c0_i32_0 = arith.constant 0 : i32
    %c0_i32_1 = arith.constant 0 : i32
    return %arg0, %c0_i32, %c0_i32_0 : i32, i32, i32
  }
  func.func @transform_1(%arg0: i32, %arg1: i32) -> (i32, i32) {
    %c0_i32 = arith.constant 0 : i32
    %c0_i32_0 = arith.constant 0 : i32
    %c0_i32_1 = arith.constant 0 : i32
    return %c0_i32, %c0_i32_0 : i32, i32
  }
  func.func @transform_2(%arg0: i32, %arg1: i32) -> (i32, i32) {
    %c0_i32 = arith.constant 0 : i32
    %c0_i32_0 = arith.constant 0 : i32
    %c0_i32_1 = arith.constant 0 : i32
    return %c0_i32, %c0_i32_0 : i32, i32
  }
  func.func @transform_3(%arg0: i32, %arg1: i32) -> (i32, i32) {
    %c0_i32 = arith.constant 0 : i32
    %c0_i32_0 = arith.constant 0 : i32
    %c0_i32_1 = arith.constant 0 : i32
    return %c0_i32, %c0_i32_0 : i32, i32
  }
  func.func @transform_4(%arg0: i32, %arg1: i32) -> (i32, i32) {
    %c0_i32 = arith.constant 0 : i32
    %c0_i32_0 = arith.constant 0 : i32
    %c0_i32_1 = arith.constant 0 : i32
    return %c0_i32, %c0_i32_0 : i32, i32
  }
  func.func @transform_5(%arg0: i32, %arg1: i32) -> (i32, i32) {
    %c0_i32 = arith.constant 0 : i32
    %c0_i32_0 = arith.constant 0 : i32
    %c0_i32_1 = arith.constant 0 : i32
    return %c0_i32, %c0_i32_0 : i32, i32
  }
  func.func @transform_6(%arg0: i32, %arg1: i32) -> (i32, i32) {
    %c0_i32 = arith.constant 0 : i32
    %c0_i32_0 = arith.constant 0 : i32
    %c0_i32_1 = arith.constant 0 : i32
    return %c0_i32, %c0_i32_0 : i32, i32
  }
  func.func @transform_7(%arg0: i32, %arg1: i32) -> (i32, i32) {
    %c0_i32 = arith.constant 0 : i32
    %c0_i32_0 = arith.constant 0 : i32
    %c0_i32_1 = arith.constant 0 : i32
    return %c0_i32, %c0_i32_0 : i32, i32
  }
  func.func @transform_8(%arg0: i32, %arg1: i32) -> (i32, i32) {
    %c0_i32 = arith.constant 0 : i32
    %c0_i32_0 = arith.constant 0 : i32
    %c0_i32_1 = arith.constant 0 : i32
    return %c0_i32, %c0_i32_0 : i32, i32
  }
  func.func @transform_9(%arg0: i32, %arg1: i32) -> (i32, i32) {
    %c0_i32 = arith.constant 0 : i32
    %c0_i32_0 = arith.constant 0 : i32
    %c0_i32_1 = arith.constant 0 : i32
    return %c0_i32, %c0_i32_0 : i32, i32
  }
  func.func @transform_10(%arg0: i32, %arg1: i32) -> (i32, i32) {
    %c0_i32 = arith.constant 0 : i32
    %c0_i32_0 = arith.constant 0 : i32
    %c0_i32_1 = arith.constant 0 : i32
    return %c0_i32, %c0_i32_0 : i32, i32
  }
  func.func @transform_11(%arg0: i32, %arg1: i32) -> (i32, i32) {
    %c0_i32 = arith.constant 0 : i32
    %c0_i32_0 = arith.constant 0 : i32
    %c0_i32_1 = arith.constant 0 : i32
    return %c0_i32, %c0_i32_0 : i32, i32
  }
  func.func @transform_12(%arg0: i32, %arg1: i32) -> (i32, i32) {
    %c0_i32 = arith.constant 0 : i32
    %c0_i32_0 = arith.constant 0 : i32
    %c0_i32_1 = arith.constant 0 : i32
    return %c0_i32, %c0_i32_0 : i32, i32
  }
  func.func @transform_13(%arg0: i32, %arg1: i32) -> (i32, i32) {
    %c0_i32 = arith.constant 0 : i32
    %c0_i32_0 = arith.constant 0 : i32
    %c0_i32_1 = arith.constant 0 : i32
    return %c0_i32, %c0_i32_0 : i32, i32
  }
  func.func @transform_14(%arg0: i32, %arg1: i32) -> (i32, i32, i32) {
    %c0_i32 = arith.constant 0 : i32
    %c0_i32_0 = arith.constant 0 : i32
    return %arg0, %arg1, %c0_i32 : i32, i32, i32
  }
}

</mosaic_0001>

<bundles_post_ra>
// kernel: tpu_custom_call.1
= control target key start
LH: loop header
LB: loop body
LE: loop exit
PB: predicated region body
PF: predicated region fallthrough
CT: control target
= control target key end

     0   :  { %s2847_s0 = inlined_call_operand.hbm [shape: f32[2,8,32], index: 0, kind: input, shape index: {}]   ;;  %s2848_s1 = inlined_call_operand.vmem [shape: f32[1,32], index: 1, kind: input, shape index: {}]   ;;  %s2849_s2 = inlined_call_operand.vmem [shape: f32[1,32], index: 2, kind: input, shape index: {}]   ;;  %s2850_s3 = inlined_call_operand.vmem [shape: f32[32,32], index: 3, kind: input, shape index: {}]   ;;  %s2851_s4 = inlined_call_operand.vmem [shape: f32[32,32], index: 4, kind: input, shape index: {}]   ;;  %s2852_s5 = inlined_call_operand.vmem [shape: f32[32,32], index: 5, kind: input, shape index: {}]   ;;  %s2853_s6 = inlined_call_operand.vmem [shape: f32[32,32], index: 6, kind: input, shape index: {}]   ;;  %s2854_s7 = inlined_call_operand.vmem [shape: f32[1,32], index: 7, kind: input, shape index: {}]   ;;  %s2855_s8 = inlined_call_operand.vmem [shape: f32[1,32], index: 8, kind: input, shape index: {}]   ;;  %s2856_s9 = inlined_call_operand.vmem [shape: f32[1,32], index: 9, kind: input, shape index: {}]   ;;  %s2857_s10 = inlined_call_operand.vmem [shape: f32[32,128], index: 10, kind: input, shape index: {}]   ;;  %s2858_s11 = inlined_call_operand.vmem [shape: f32[1,128], index: 11, kind: input, shape index: {}]   ;;  %s2859_s12 = inlined_call_operand.vmem [shape: f32[128,32], index: 12, kind: input, shape index: {}]   ;;  %s2860_s13 = inlined_call_operand.vmem [shape: f32[1,32], index: 13, kind: input, shape index: {}]   ;;  %s2861_s14 = inlined_call_operand.hbm [shape: f32[2,8,32], index: 14, kind: output, shape index: {}]  }
   0x1   :  { %2867 = sst [smem:[#allocation13_spill]] %s2860_s13 }
   0x2   :  { %2868 = sst [smem:[#allocation14_spill]] %s2861_s14 }
   0x3   :  { %19 = vsyncpa [#allocation4], 0 }
   0x4   :  { %21 = vsyncpa [#allocation4 + $0x1], 0 }
   0x5   :  { %22 = vsyncpa [#allocation5], 0 }
   0x6   :  { %24 = vsyncpa [#allocation5 + $0x1], 0  ;;  %s2426_s29 = smov 0   ;;  %s2428_s30 = smov 0  }
   0x7   :  { %s2430_s15 = smov 0   ;;  %s2432_s16 = smov 0  }
   0x8   :  { %s2434_s17 = smov 0   ;;  %s2436_s18 = smov 0  }
   0x9 LB: > { %2869 = sst [smem:[#allocation9_spill]] %s2318_s29  ;;  %s1854_s19 = sadd.s32 4294967295, %s2338_s18   ;;  %s2338_s18 = sphi %s2436_s18, %s30_s18   ;;  %s2334_s17 = sphi %s2434_s17, %s2888_s17   ;;  %s2330_s16 = sphi %s2432_s16, %s2887_s16   ;;  %s2326_s15 = sphi %s2430_s15, %s2891_s15   ;;  %s2322_s30 = sphi %s2428_s30, %s2890_s30   ;;  %s2318_s29 = sphi %s2426_s29, %s2889_s29  }
   0xa   : > { %2870 = sst [smem:[#allocation10_spill]] %s2334_s17  ;;  %s1855_s20 = sadd.s32 4294967294, %s2338_s18  }
   0xb   : > { %s42_s21 = sadd.s32 1, %s2334_s17  ;;  %s49_s22 = sadd.s32 1, %s2326_s15 }
   0xc   : > { %p44_p0 = scmp.ge.s32.totalorder %s42_s21, 2  ;;  %p56_p1 = scmp.ne.s32.totalorder %s2326_s15, %s2322_s30 }
   0xd   : > { %p57_p2 = scmp.eq.s32.totalorder %s2338_s18, 0  ;;  %p62_p3 = scmp.ne.s32.totalorder %s2322_s30, %s2318_s29 }
   0xe   : > { %s2893_s21 = smov (%p44_p0, %s42_s21), 0  ;;  %p63_p5 = scmp.eq.s32.totalorder %s1854_s19, 0 }
   0xf   : > { %2871 = sst [smem:[#allocation11_spill]] %s2893_s21  ;;  %p2467_p4 = por %p57_p2, %p56_p1 }
  0x10   : > { %s46_s24 = ssub.s32 %s2334_s17, %s2893_s21  ;;  %p361_p6 = scmp.eq.s32.totalorder %s1854_s19, 1 }
  0x11   : > { %p47_p7 = scmp.eq.s32.totalorder %s46_s24, 0  ;;  %p2473_p8 = por %p63_p5, %p62_p3 }
  0x12   : > { %p2477_p9 = por %p361_p6, %p56_p1  ;;  %p367_p10 = scmp.eq.s32.totalorder %s1855_s20, 1 }
  0x13   : > { %s2482_s27 = scalar_select %p47_p7, %s2326_s15, %s49_s22  }
  0x14   : > { %s2874_s26 = scalar_select %p2477_p9, 1, 0 }
  0x15   : > { %2875 = sst [smem:[#allocation12_spill]] %s2482_s27  ;;  %p2484_p11 = por %p367_p10, %p62_p3 }
  0x16   : > { %p2145_p13 = scmp.lt.s32.totalorder %s2338_s18, 2  ;;  %s426_s19 = sand.u32 1, %s2326_s15  }
  0x17   : > { %s2876_s28 = scalar_select %p2484_p11, 1, 0 }
  0x18   : > { %s1858_s24 = sshll.u32 %s426_s19, 3  ;;  %s1859_s21 = sshll.u32 %s2334_s17, 7 }
  0x19   : > { %s2495_s13 = scalar_lea.hbm %s2847_s0, %s1859_s21  ;;  %s430_s20 = scalar_lea.vmem [#allocation3], %s1858_s24 }
  0x1a   : > { %s437_s22 = sshll.u32 %s430_s20, 4  ;;  %p2501_p0 = pnand %p2145_p13, %p2467_p4  ;;  %s2497_s22 = int_to_ptr.vmem [resolvable:$true] %s437_s22 }
  0x1b   : > { %s427_s14 = scalar_lea.sflag [#allocation4], %s426_s19  ;;  %s2226_s29 = scalar_lea.hbm %s2495_s13, 128 }
  0x1c   : > { %p2227_p3 = scmp.ne.s32.totalorder %s2495_s13, %s2226_s29  ;;  %p2228_p5 = pneg %p2501_p0 }
  0x1d   : > { %s2231_s23 = scalar_lea.hbm %s2847_s0, 256  ;;  %p2232_p4 = scmp.lt.u32.totalorder %s2495_s13, %s2847_s0 }
  0x1e   : > { %p2229_p6 = pnand %p2228_p5, %p2227_p3  ;;  %p2233_p10 = scmp.lt.u32.totalorder %s2231_s23, %s2226_s29 }
  0x1f   : > { %p2235_p12 = scmp.lt.u32.totalorder %s2226_s29, %s2495_s13 }
  0x20   : > { %p2230_p7 = pneg %p2229_p6  ;;  %p2234_p13 = por %p2233_p10, %p2232_p4 }
  0x22   : > { %p2236_p1 = por %p2235_p12, %p2234_p13 }
  0x24   : > { %p2237_p2 = pnand %p2236_p1, %p2230_p7 }
  0x26   : > { %2240 = shalt.err (!%p2237_p2)
}
  0x27   : > { %s2241_s19 = scalar_lea.vmem %s2497_s22, 128  ;;  %s2340_s21 = smov [#allocation3]  }
  0x28   : > { %p2242_p3 = scmp.ne.s32.totalorder %s2497_s22, %s2241_s19  ;;  %s2246_s24 = sshll.u32 %s2340_s21, 4  ;;  %s2247_s24 = int_to_ptr.vmem [resolvable:$false] %s2246_s24 }
  0x29   : > { %s2248_s17 = scalar_lea.vmem %s2247_s24, 256  ;;  %p2249_p9 = scmp.lt.s32.totalorder %s2497_s22, %s2247_s24 }
  0x2a   : > { %p2244_p6 = pnand %p2242_p3, %p2228_p5  ;;  %p2250_p4 = scmp.lt.s32.totalorder %s2248_s17, %s2241_s19 }
  0x2c   : > { %p2245_p11 = pneg %p2244_p6  ;;  %p2251_p10 = por %p2250_p4, %p2249_p9 }
  0x2e   : > { %p2252_p12 = pnand %p2251_p10, %p2245_p11 }
  0x30   : > { %2255 = shalt.err (!%p2252_p12)
}
  0x31   : > { %2140 = dma.hbm_to_vmem [thread:$0]  (!%p2501_p0), %s2495_s13, 128, %s2497_s22, %s427_s14  }
  0x32   : > { %p2878_p1 = scmp.lt.s32.totalorder %s2338_s18, 3  ;;  %p2879_p2 = scmp.ge.s32.totalorder %s2338_s18, 1 }
  0x34   : > { %p443_p5 = pnand %p2879_p2, %p2878_p1 }
  0x35   : > { %s2537_s29 = sand.u32 (!%p443_p5), 1, %s2322_s30  }
  0x36   : > { %446 = sbr.rel (%p443_p5) target bundleno = 2604 (0xa2c), region = 76  ;;  %s1861_s23 = sshll.u32 (!%p443_p5), %s2537_s29, 3 }
  0x37   : > { %s449_s20 = scalar_lea.sflag (!%p443_p5), [#allocation4], %s2537_s29  ;;  %s452_s27 = scalar_lea.vmem (!%p443_p5), [#allocation3], %s1861_s23 }
  0x3d   : > { %2309 = dma.done.wait (%p2473_p8), %s449_s20, 128  }
  0x3e   : > { %2311 = vsyncadd (%p2473_p8), %s449_s20, 4294967168  ;;  %vm501_vm0 = vcmask 261120   ;;  %v2547_v0 = vld [vmem:[%s452_s27] sm:$0xff]  ;;  %v547_v12 = vld [vmem:[%s2850_s3] sm:$0xff]  ;;  %v2341_v15 = vmov 0.0|0.0   ;;  %vm2342_vm1 = vmmov 0   ;;  %v776_v61 = vlaneseq }
  0x3f   : > { %v532_v1 = vsel %vm501_vm0, %v2547_v0, 0.0  ;;  %v548_v13 = vld [vmem:[%s2850_s3 + $0x8] sm:$0xff]  ;;  %2079 = vmatprep.subr.bf16.mxu1 %v2341_v15  ;;  %v549_v16 = vld [vmem:[%s2850_s3 + $0x10] sm:$0xff]  ;;  %v550_v17 = vld [vmem:[%s2850_s3 + $0x18] sm:$0xff]  ;;  %v2343_v19 = vmov 0.0   ;;  %s2344_s20 = smov 120  }
  0x40   : > { %533 = vadd.xlane.f32.xlu0 %v532_v1  ;;  %v2080_v14 = vpack.c.bf16 %v548_v13, %v547_v12  ;;  %v2083_v18 = vpack.c.bf16 %v550_v17, %v549_v16  ;;  %1957 = vmatprep.mubr.msk.f32.mxu1 %vm2342_vm1, %v2343_v19  ;;  %v1863_v27 = vld [vmem:[%s2848_s1] ss:$0 sm:$0xff]  ;;  %v626_v30 = vld [vmem:[%s2851_s4 + $0x8] sm:$0xff]  ;;  %v627_v37 = vld [vmem:[%s2851_s4 + $0x10] sm:$0xff]  ;;  %vm783_vm2 = vcmask 64512   ;;  %s2345_s27 = smov 112  }
  0x41   : > { %1992 = vmatprep.subr.mxu0 %v2343_v19  ;;  %1994 = vmatprep.mubr.msk.f32.mxu0 %vm2342_vm1, %v2343_v19  ;;  %v625_v29 = vld [vmem:[%s2851_s4] sm:$0xff]  ;;  %v628_v38 = vld [vmem:[%s2851_s4 + $0x18] sm:$0xff]  ;;  %v703_v42 = vld [vmem:[%s2852_s5 + $0x8] sm:$0xff]  ;;  %s2346_s13 = smov 104   ;;  %v777_v62 = vshrl.u32 %v776_v61, 7  ;;  %v781_v63 = vand.u32 127, %v776_v61 }
  0x42   : > { %2081 = vmatpush3.bf16.msra.mxu1 %v2080_v14  ;;  %v1864_v31 = vld [vmem:[%s2849_s2] ss:$0 sm:$0xff]  ;;  %v2086_v34 = vpack.c.bf16 %v626_v30, %v625_v29  ;;  %v2089_v39 = vpack.c.bf16 %v628_v38, %v627_v37  ;;  %v704_v45 = vld [vmem:[%s2852_s5 + $0x10] sm:$0xff]  ;;  %v705_v46 = vld [vmem:[%s2852_s5 + $0x18] sm:$0xff]  ;;  %s2347_s25 = smov 8   ;;  %s2348_s22 = smov 16  }
  0x43   : > { %2082 = vmatprep.subr.bf16.mxu1 %v2341_v15  ;;  %v702_v41 = vld [vmem:[%s2852_s5] sm:$0xff]  ;;  %v2095_v47 = vpack.c.bf16 %v705_v46, %v704_v45  ;;  %vm782_vm3 = vcmp.le.s32.totalorder %v781_v63, %v777_v62  ;;  %v1465_v61 = vld [vmem:[%s2853_s6 + $0x8] sm:$0xff]  ;;  %v1466_v63 = vld [vmem:[%s2853_s6 + $0x10] sm:$0xff]  ;;  %vm1117_vm4 = vcmask 130112   ;;  %vm1289_vm5 = vcmask 195712   ;;  %s1888_s14 = sshll.u32 %s2330_s16, 7 }
  0x44   : > { %503 = vadd.xlane.f32.xlu0 %v532_v1  ;;  %v2092_v43 = vpack.c.bf16 %v703_v42, %v702_v41  ;;  %vm1461_vm6 = vcmask 261312   ;;  %s496_s19 = scalar_lea.vmem [#allocation6], %s1861_s23  ;;  %s1759_s16 = scalar_lea.sflag [#allocation5], %s2537_s29 }
  0x45   : > { %s1773_s21 = sshll.u32 %s496_s19, 4  ;;  %p2882_p9 = scmp.ne.s32.totalorder %s2874_s26, 0  ;;  %s2799_s21 = int_to_ptr.vmem [resolvable:$true] %s1773_s21 }
  0x46   : > { %2084 = vmatpush3.bf16.msra.mxu1 %v2083_v18  ;;  %s2350_s23 = smov [#allocation6]  }
  0x47   : > { %2085 = vmatprep.subr.bf16.mxu1 %v2341_v15 }
  0xcd   : > { %v534_v2 = vpop.xlane.xlu0 %533 }
  0xce   : > { %v535_v3 = vmul.f32 0.03125, %v534_v2 }
  0xd0   : > { %v536_v4 = vsub.f32 %v2547_v0, %v535_v3 }
  0xd1   : > { %v504_v5 = vpop.xlane.xlu0 %503 }
  0xd2   : > { %v506_v6 = vmul.f32 0.03125, %v504_v5  ;;  %v537_v7 = vmul.f32 %v536_v4, %v536_v4 }
  0xd4   : > { %v507_v8 = vsub.f32 %v2547_v0, %v506_v6  ;;  %v538_v9 = vsel %vm501_vm0, %v537_v7, 0.0 }
  0xd5   : > { %539 = vadd.xlane.f32.xlu1 %v538_v9 }
  0xd6   : > { %v508_v10 = vmul.f32 %v507_v8, %v507_v8 }
  0xd8   : > { %v509_v11 = vsel %vm501_vm0, %v508_v10, 0.0 }
  0xd9   : > { %510 = vadd.xlane.f32.xlu1 %v509_v11 }
 0x162   : > { %v540_v20 = vpop.xlane.xlu1 %539 }
 0x163   : > { %v541_v21 = vmul.f32 0.03125, %v540_v20 }
 0x165   : > { %v542_v22 = vadd.f32 1e-05, %v541_v21 }
 0x166   : > { %v511_v23 = vpop.xlane.xlu1 %510 }
 0x167   : > { %2204 = vrsqrt.f32 %v542_v22  ;;  %v512_v24 = vmul.f32 0.03125, %v511_v23 }
 0x169   : > { %v513_v25 = vadd.f32 1e-05, %v512_v24 }
 0x16b   : > { %2206 = vrsqrt.f32 %v513_v25 }
 0x171   : > { %v2205_v26 = vpop.eup %2204 }
 0x172   : > { %v544_v28 = vmul.f32 %v2205_v26, %v536_v4 }
 0x174   : > { %v545_v32 = vmul.f32 %v1863_v27, %v544_v28 }
 0x175   : > { %v2207_v33 = vpop.eup %2206 }
 0x176   : > { %v515_v35 = vmul.f32 %v2207_v33, %v507_v8  ;;  %v546_v36 = vadd.f32 %v1864_v31, %v545_v32 }
 0x178   : > { %1958 = vmatmul.mubr.msk.f32.vlgmr.msra.gmra.mrb[0].mxu1 %vm501_vm0, %v546_v36  ;;  %v523_v40 = vmul.f32 %v1863_v27, %v515_v35 }
 0x179   : > { %2087 = vmatpush3.bf16.msra.mxu1 %v2086_v34  ;;  %1968 = vmatprep.mubr.msk.f32.mxu1 %vm2342_vm1, %v2343_v19 }
 0x17a   : > { %2088 = vmatprep.subr.bf16.mxu1 %v2341_v15  ;;  %v531_v44 = vadd.f32 %v1864_v31, %v523_v40 }
 0x17d   : > { %2090 = vmatpush3.bf16.msra.mxu1 %v2089_v39 }
 0x17e   : > { %2091 = vmatprep.subr.bf16.mxu1 %v2341_v15 }
 0x180   : > { %1969 = vmatmul.mubr.msk.f32.vlgmr.msra.gmra.mrb[2].mxu1 %vm501_vm0, %v531_v44 }
 0x181   : > { %2093 = vmatpush3.bf16.msra.mxu1 %v2092_v43  ;;  %1979 = vmatprep.mubr.msk.f32.mxu1 %vm2342_vm1, %v2343_v19 }
 0x182   : > { %2094 = vmatprep.subr.bf16.mxu1 %v2341_v15 }
 0x185   : > { %2096 = vmatpush3.bf16.msra.mxu1 %v2095_v47 }
 0x186   : > { %1982 = vmatprep.subr.mxu1 %v2343_v19 }
 0x188   : > { %1980 = vmatmul.mubr.msk.f32.vlgmr.msra.gmra.mrb[4].mxu1 %vm501_vm0, %v531_v44 }
 0x189   : > { %1984 = vmatprep.mubr.msk.f32.mxu1 %vm2342_vm1, %v2343_v19 }
 0x24b   : > { %v620_v48 = vpop.f32.mrb[0].mxu1 }
 0x24c   : > { %v624_v49 = vmul.f32 0.17677669, %v620_v48  ;;  %v1959_v50 = vpop.f32.mrb[1].mxu1 }
 0x24e   : > { %946 = vrot.lane.b32.xlu1 %v624_v49, %s2344_s20 }
 0x253   : > { %v698_v51 = vpop.f32.mrb[2].mxu1 }
 0x254   : > { %1121 = vrot.lane.b32.xlu1 %v698_v51, %s2345_s27  ;;  %948 = vrot.lane.b32.xlu0 %v698_v51, %s2344_s20  ;;  %v1970_v52 = vpop.f32.mrb[3].mxu1 }
 0x255   : > { %1983 = vmatpush3.xpose.msk.msra.mxu1 %vm783_vm2, %v698_v51 }
 0x256   : > { %1987 = vmatprep.subr.mxu1 %v2343_v19 }
 0x258   : > { %1985 = vmatmul.mubr.msk.f32.vlgmr.msra.gmra.mrb[6].mxu1 %vm783_vm2, %v624_v49  ;;  %1119 = vrot.lane.b32.xlu1 %v624_v49, %s2345_s27 }
 0x259   : > { %1293 = vrot.lane.b32.xlu0 %v698_v51, %s2346_s13  ;;  %1989 = vmatprep.mubr.msk.f32.mxu1 %vm2342_vm1, %v2343_v19 }
 0x25b   : > { %v2628_v53 = vpop.f32.mrb[4].mxu1 }
 0x25c   : > { %1291 = vrot.lane.b32.xlu1 %v624_v49, %s2346_s13  ;;  %v1981_v54 = vpop.f32.mrb[5].mxu1  ;;  %1988 = vmatpush3.msra.mxu1 %v2628_v53 }
 0x25d   : > { %1997 = vmatprep.subr.mxu1 %v2343_v19 }
 0x2c0   : > { %v947_v55 = vpop.permute.xlu1 %946 }
 0x2c6   : > { %v949_v56 = vpop.permute.xlu0 %948  ;;  %v1122_v57 = vpop.permute.xlu1 %1121 }
 0x2c7   : > { %1993 = vmatpush3.xpose.msk.msra.mxu0 %vm783_vm2, %v949_v56 }
 0x2c8   : > { %2002 = vmatprep.subr.mxu0 %v2343_v19 }
 0x2ca   : > { %1995 = vmatmul.mubr.msk.f32.vlgmr.msra.gmra.mrb[0].mxu0 %vm783_vm2, %v947_v55  ;;  %v1120_v58 = vpop.permute.xlu1 %1119 }
 0x2cb   : > { %2003 = vmatpush3.xpose.msk.msra.mxu0 %vm783_vm2, %v1122_v57  ;;  %2004 = vmatprep.mubr.msk.f32.mxu0 %vm2342_vm1, %v2343_v19  ;;  %v1294_v59 = vpop.permute.xlu0 %1293 }
 0x2cc   : > { %2012 = vmatprep.subr.mxu0 %v2343_v19 }
 0x2ce   : > { %2005 = vmatmul.mubr.msk.f32.vlgmr.msra.gmra.mrb[2].mxu0 %vm783_vm2, %v1120_v58  ;;  %v1292_v60 = vpop.permute.xlu1 %1291 }
 0x2cf   : > { %2013 = vmatpush3.xpose.msk.msra.mxu0 %vm783_vm2, %v1294_v59  ;;  %2014 = vmatprep.mubr.msk.f32.mxu0 %vm2342_vm1, %v2343_v19 }
 0x2d0   : > { %2097 = vmatprep.subr.bf16.mxu0 %v2341_v15 }
 0x2d2   : > { %2015 = vmatmul.mubr.msk.f32.vlgmr.msra.gmra.mrb[4].mxu0 %vm783_vm2, %v1292_v60  ;;  %v1464_v60 = vld [vmem:[%s2853_s6] sm:$0xff] }
 0x2d3   : > { %2030 = vmatprep.mubr.msk.f32.mxu0 %vm2342_vm1, %v2343_v19  ;;  %v2098_v62 = vpack.c.bf16 %v1465_v61, %v1464_v60 }
 0x2d5   : > { %2099 = vmatpush3.bf16.msra.mxu0 %v2098_v62 }
 0x2d6   : > { %2100 = vmatprep.subr.bf16.mxu0 %v2341_v15 }
 0x32b   : > { %v856_v1 = vpop.f32.mrb[6].mxu1 }
 0x32c   : > { %v860_v2 = vsel %vm782_vm3, %v856_v1, -1e+30  ;;  %v1986_v3 = vpop.f32.mrb[7].mxu1  ;;  %v1467_v1 = vld [vmem:[%s2853_s6 + $0x18] sm:$0xff] }
 0x32d   : > { %v861_v4 = vsel %vm783_vm2, %v860_v2, -inf }
 0x32e   : > { %862 = vmax.xlane.f32.xlu0 %v861_v4 }
 0x39d   : > { %v1020_v5 = vpop.f32.mrb[0].mxu0 }
 0x39e   : > { %v1024_v6 = vsel %vm782_vm3, %v1020_v5, -1e+30  ;;  %v1996_v7 = vpop.f32.mrb[1].mxu0 }
 0x39f   : > { %v1025_v8 = vsel %vm783_vm2, %v1024_v6, -inf }
 0x3a0   : > { %1026 = vmax.xlane.f32.xlu1 %v1025_v8 }
 0x3a1   : > { %v1193_v9 = vpop.f32.mrb[2].mxu0 }
 0x3a2   : > { %v1197_v10 = vsel %vm782_vm3, %v1193_v9, -1e+30  ;;  %v2006_v11 = vpop.f32.mrb[3].mxu0  ;;  %v1880_v9 = vld [vmem:[%s2854_s7] ss:$0 sm:$0xff] }
 0x3a3   : > { %v1198_v12 = vsel %vm783_vm2, %v1197_v10, -inf }
 0x3a4   : > { %1199 = vmax.xlane.f32.xlu0 %v1198_v12 }
 0x3a5   : > { %v1365_v13 = vpop.f32.mrb[4].mxu0 }
 0x3a6   : > { %v1369_v14 = vsel %vm782_vm3, %v1365_v13, -1e+30  ;;  %v2016_v16 = vpop.f32.mrb[5].mxu0 }
 0x3a7   : > { %v1370_v17 = vsel %vm783_vm2, %v1369_v14, -inf }
 0x3a8   : > { %1371 = vmax.xlane.f32.xlu0 %v1370_v17 }
 0x3bb   : > { %v863_v18 = vpop.xlane.xlu0 %862 }
 0x3bc   : > { %v864_v20 = vsub.f32 %v860_v2, %v863_v18  ;;  %v2101_v2 = vpack.c.bf16 %v1467_v1, %v1466_v63 }
 0x3be   : > { %v865_v21 = vmul.f32 1.442695, %v864_v20  ;;  %2102 = vmatpush3.bf16.msra.mxu0 %v2101_v2 }
 0x3bf   : > { %2109 = vmatprep.subr.bf16.mxu0 %v2341_v15 }
 0x3c0   : > { %2208 = vpow2.f32 %v865_v21  ;;  %v1578_v21 = vld [vmem:[%s2857_s10] sm:$0xff] }
 0x3ca   : > { %v2209_v22 = vpop.eup %2208 }
 0x3cb   : > { %v867_v23 = vsel %vm783_vm2, %v2209_v22, 0.0 }
 0x3cc   : > { %868 = vadd.xlane.f32.xlu0 %v867_v23  ;;  %v1580_v23 = vld [vmem:[%s2857_s10 + $0x10] sm:$0xff] }
 0x42d   : > { %v1027_v24 = vpop.xlane.xlu1 %1026 }
 0x42e   : > { %v1028_v25 = vsub.f32 %v1024_v6, %v1027_v24  ;;  %v1581_v24 = vld [vmem:[%s2857_s10 + $0x18] sm:$0xff] }
 0x430   : > { %v1029_v26 = vmul.f32 1.442695, %v1028_v25  ;;  %v2107_v25 = vpack.c.bf16 %v1581_v24, %v1580_v23 }
 0x431   : > { %v1200_v27 = vpop.xlane.xlu0 %1199 }
 0x432   : > { %2210 = vpow2.f32 %v1029_v26  ;;  %v1201_v28 = vsub.f32 %v1197_v10, %v1200_v27  ;;  %v1663_v26 = vld [vmem:[%s2859_s12] sm:$0xff]  ;;  %v1664_v27 = vld [vmem:[%s2859_s12 + $0x8] sm:$0xff] }
 0x434   : > { %v1202_v29 = vmul.f32 1.442695, %v1201_v28  ;;  %v1665_v28 = vld [vmem:[%s2859_s12 + $0x10] sm:$0xff] }
 0x435   : > { %v1372_v34 = vpop.xlane.xlu0 %1371 }
 0x436   : > { %2212 = vpow2.f32 %v1202_v29  ;;  %v1373_v36 = vsub.f32 %v1369_v14, %v1372_v34  ;;  %v2110_v29 = vpack.c.bf16 %v1664_v27, %v1663_v26 }
 0x438   : > { %v1374_v37 = vmul.f32 1.442695, %v1373_v36  ;;  %v1670_v36 = vld [vmem:[%s2859_s12 + $0x38] sm:$0xff] }
 0x43c   : > { %v2211_v30 = vpop.eup %2210 }
 0x43d   : > { %v1031_v31 = vsel %vm783_vm2, %v2211_v30, 0.0 }
 0x43e   : > { %1032 = vadd.xlane.f32.xlu1 %v1031_v31 }
 0x440   : > { %v2213_v32 = vpop.eup %2212 }
 0x441   : > { %v1204_v33 = vsel %vm783_vm2, %v2213_v32, 0.0 }
 0x442   : > { %1205 = vadd.xlane.f32.xlu0 %v1204_v33  ;;  %v1668_v33 = vld [vmem:[%s2859_s12 + $0x28] sm:$0xff] }
 0x44f   : > { %1209 = vrot.lane.b32.xlu1 %v2628_v53, %s2345_s27 }
 0x458   : > { %1037 = vrot.lane.b32.xlu0 %v2628_v53, %s2344_s20  ;;  %s2881_s20 = sld [smem:[#allocation14_spill]] }
 0x459   : > { %v869_v35 = vpop.xlane.xlu0 %868 }
 0x45a   : > { %2214 = vrcp.f32 %v869_v35  ;;  %v1669_v35 = vld [vmem:[%s2859_s12 + $0x30] sm:$0xff] }
 0x45b   : > { %2216 = vpow2.f32 %v1374_v37  ;;  %v2119_v37 = vpack.c.bf16 %v1670_v36, %v1669_v35 }
 0x45e   : > { %s2797_s27 = scalar_lea.hbm %s2881_s20, %s1888_s14 }
 0x464   : > { %v2215_v38 = vpop.eup %2214 }
 0x465   : > { %v871_v39 = vmul.f32 %v2215_v38, %v2209_v22  ;;  %v2217_v40 = vpop.eup %2216  ;;  %v1671_v38 = vld [vmem:[%s2859_s12 + $0x40] sm:$0xff] }
 0x466   : > { %v1376_v41 = vsel %vm783_vm2, %v2217_v40, 0.0 }
 0x467   : > { %1990 = vmatmul.mubr.msk.f32.vlgmr.msra.gmra.mrb[8].mxu1 %vm783_vm2, %v871_v39  ;;  %v1672_v39 = vld [vmem:[%s2859_s12 + $0x48] sm:$0xff] }
 0x468   : > { %1999 = vmatprep.mubr.msk.f32.mxu1 %vm2342_vm1, %v2343_v19 }
 0x473   : > { %1377 = vadd.xlane.f32.xlu1 %v1376_v41  ;;  %v1673_v41 = vld [vmem:[%s2859_s12 + $0x50] sm:$0xff] }
 0x484   : > { %1381 = vrot.lane.b32.xlu1 %v2628_v53, %s2346_s13  ;;  %s2256_s13 = scalar_lea.vmem %s2799_s21, 128 }
 0x485   : > { %p2257_p8 = scmp.ne.s32.totalorder %s2799_s21, %s2256_s13 }
 0x487   : > { %p2258_p11 = pnand %p2257_p8, %p2882_p9 }
 0x489   : > { %p2259_p0 = pneg %p2258_p11 }
 0x4cb   : > { %v1033_v42 = vpop.xlane.xlu1 %1032 }
 0x4cc   : > { %2218 = vrcp.f32 %v1033_v42  ;;  %v1674_v42 = vld [vmem:[%s2859_s12 + $0x58] sm:$0xff] }
 0x4cf   : > { %v1206_v43 = vpop.xlane.xlu0 %1205  ;;  %v1210_v47 = vpop.permute.xlu1 %1209 }
 0x4d0   : > { %2220 = vrcp.f32 %v1206_v43  ;;  %v2125_v43 = vpack.c.bf16 %v1674_v42, %v1673_v41 }
 0x4d3   : > { %v1038_v44 = vpop.permute.xlu0 %1037 }
 0x4d4   : > { %1998 = vmatpush3.msra.mxu1 %v1038_v44  ;;  %v1675_v44 = vld [vmem:[%s2859_s12 + $0x60] sm:$0xff] }
 0x4d5   : > { %2007 = vmatprep.subr.mxu1 %v2343_v19 }
 0x4d6   : > { %v2219_v45 = vpop.eup %2218 }
 0x4d7   : > { %v1035_v46 = vmul.f32 %v2219_v45, %v2211_v30  ;;  %v1666_v30 = vld [vmem:[%s2859_s12 + $0x18] sm:$0xff]  ;;  %v1676_v45 = vld [vmem:[%s2859_s12 + $0x68] sm:$0xff] }
 0x4d8   : > { %v2113_v31 = vpack.c.bf16 %v1666_v30, %v1665_v28 }
 0x4d9   : > { %2000 = vmatmul.mubr.msk.f32.vlgmr.msra.gmra.mrb[10].mxu1 %vm783_vm2, %v1035_v46  ;;  %v2128_v46 = vpack.c.bf16 %v1676_v45, %v1675_v44 }
 0x4da   : > { %v2221_v48 = vpop.eup %2220  ;;  %2008 = vmatpush3.msra.mxu1 %v1210_v47  ;;  %2009 = vmatprep.mubr.msk.f32.mxu1 %vm2342_vm1, %v2343_v19 }
 0x4db   : > { %v1208_v49 = vmul.f32 %v2221_v48, %v2213_v32  ;;  %2017 = vmatprep.subr.mxu1 %v2343_v19  ;;  %v1667_v32 = vld [vmem:[%s2859_s12 + $0x20] sm:$0xff] }
 0x4dc   : > { %v2116_v34 = vpack.c.bf16 %v1668_v33, %v1667_v32 }
 0x4dd   : > { %2010 = vmatmul.mubr.msk.f32.vlgmr.msra.gmra.mrb[12].mxu1 %vm783_vm2, %v1208_v49 }
 0x4de   : > { %2019 = vmatprep.mubr.msk.f32.mxu1 %vm2342_vm1, %v2343_v19 }
 0x500   : > { %v1378_v50 = vpop.xlane.xlu1 %1377 }
 0x501   : > { %2222 = vrcp.f32 %v1378_v50 }
 0x504   : > { %v1382_v51 = vpop.permute.xlu1 %1381 }
 0x505   : > { %2018 = vmatpush3.msra.mxu1 %v1382_v51  ;;  %v1882_v51 = vld [vmem:[%s2855_s8] ss:$0 sm:$0xff] }
 0x506   : > { %2103 = vmatprep.subr.bf16.mxu1 %v2341_v15 }
 0x50b   : > { %v2223_v52 = vpop.eup %2222 }
 0x50c   : > { %v1380_v53 = vmul.f32 %v2223_v52, %v2217_v40  ;;  %v2122_v40 = vpack.c.bf16 %v1672_v39, %v1671_v38 }
 0x50e   : > { %2020 = vmatmul.mubr.msk.f32.vlgmr.msra.gmra.mrb[14].mxu1 %vm783_vm2, %v1380_v53  ;;  %v1883_v53 = vld [vmem:[%s2856_s9] ss:$0 sm:$0xff] }
 0x50f   : > { %2041 = vmatprep.mubr.msk.f32.mxu1 %vm2342_vm1, %v2343_v19 }
 0x53a   : > { %v941_v54 = vpop.f32.mrb[8].mxu1 }
 0x53b   : > { %945 = vst.msk [vmem:[#allocation2] sm:$0xff] %vm783_vm2, %v941_v54  ;;  %v1991_v55 = vpop.f32.mrb[9].mxu1 }
 0x5ac   : > { %v1109_v56 = vpop.f32.mrb[10].mxu1 }
 0x5ad   : > { %1114 = vrot.lane.b32.xlu1 %v1109_v56, %s2347_s25  ;;  %v2001_v57 = vpop.f32.mrb[11].mxu1  ;;  %s2349_s25 = smov 24   ;;  %v1678_v56 = vld [vmem:[%s2859_s12 + $0x78] sm:$0xff] }
 0x5b0   : > { %v1281_v58 = vpop.f32.mrb[12].mxu1 }
 0x5b1   : > { %1286 = vrot.lane.b32.xlu0 %v1281_v58, %s2348_s22  ;;  %v2011_v59 = vpop.f32.mrb[13].mxu1  ;;  %v1884_v58 = vld [vmem:[%s2858_s11] ss:$0 sm:$0xff]  ;;  %s2880_s22 = sld [smem:[#allocation13_spill]] }
 0x5b7   : > { %v1886_v63 = vld [vmem:[%s2880_s22] ss:$0 sm:$0xff] }
 0x5e1   : > { %v1453_v3 = vpop.f32.mrb[14].mxu1 }
 0x5e2   : > { %1458 = vrot.lane.b32.xlu1 %v1453_v3, %s2349_s25  ;;  %v2021_v4 = vpop.f32.mrb[15].mxu1  ;;  %s2260_s25 = sshll.u32 %s2350_s23, 4  ;;  %s2261_s25 = int_to_ptr.vmem [resolvable:$false] %s2260_s25 }
 0x5e3   : > { %s2262_s22 = scalar_lea.vmem %s2261_s25, 256  ;;  %p2263_p7 = scmp.lt.s32.totalorder %s2799_s21, %s2261_s25 }
 0x5e4   : > { %p2264_p13 = scmp.lt.s32.totalorder %s2262_s22, %s2256_s13 }
 0x5e6   : > { %p2265_p3 = por %p2264_p13, %p2263_p7 }
 0x5e8   : > { %p2266_p6 = pnand %p2265_p3, %p2259_p0 }
 0x61f   : > { %v1115_v5 = vpop.permute.xlu1 %1114 }
 0x620   : > { %1118 = vst.msk [vmem:[#allocation2] sm:$0xff] %vm1117_vm4, %v1115_v5 }
 0x623   : > { %v1287_v6 = vpop.permute.xlu0 %1286 }
 0x624   : > { %1290 = vst.msk [vmem:[#allocation2] sm:$0xff] %vm1289_vm5, %v1287_v6 }
 0x654   : > { %v1459_v7 = vpop.permute.xlu1 %1458 }
 0x655   : > { %1462 = vst.msk [vmem:[#allocation2] sm:$0xff] %vm1461_vm6, %v1459_v7 }
 0x65c   : > { %v1463_v8 = vld [vmem:[#allocation2] sm:$0xff] }
 0x65d   : > { %2031 = vmatmul.mubr.msk.f32.vlgmr.msra.gmra.mrb[6].mxu0 %vm501_vm0, %v1463_v8 }
 0x65e   : > { %2076 = vmatprep.mubr.msk.f32.mxu0 %vm2342_vm1, %v2343_v19  ;;  %2111 = vmatpush3.bf16.msra.mxu0 %v2110_v29 }
 0x65f   : > { %2112 = vmatprep.subr.bf16.mxu0 %v2341_v15 }
 0x662   : > { %2114 = vmatpush3.bf16.msra.mxu0 %v2113_v31 }
 0x663   : > { %2115 = vmatprep.subr.bf16.mxu0 %v2341_v15 }
 0x666   : > { %2117 = vmatpush3.bf16.msra.mxu0 %v2116_v34 }
 0x667   : > { %2118 = vmatprep.subr.bf16.mxu0 %v2341_v15 }
 0x66a   : > { %2120 = vmatpush3.bf16.msra.mxu0 %v2119_v37 }
 0x66b   : > { %2121 = vmatprep.subr.bf16.mxu0 %v2341_v15 }
 0x66e   : > { %2123 = vmatpush3.bf16.msra.mxu0 %v2122_v40 }
 0x66f   : > { %2124 = vmatprep.subr.bf16.mxu0 %v2341_v15 }
 0x672   : > { %2126 = vmatpush3.bf16.msra.mxu0 %v2125_v43 }
 0x673   : > { %2127 = vmatprep.subr.bf16.mxu0 %v2341_v15 }
 0x676   : > { %2129 = vmatpush3.bf16.msra.mxu0 %v2128_v46 }
 0x677   : > { %2130 = vmatprep.subr.bf16.mxu0 %v2341_v15 }
 0x730   : > { %v1544_v10 = vpop.f32.mrb[6].mxu0 }
 0x731   : > { %v1545_v11 = vadd.f32 %v1880_v9, %v1544_v10  ;;  %v2032_v12 = vpop.f32.mrb[7].mxu0 }
 0x733   : > { %v2703_v13 = vadd.f32 %v1545_v11, %v2547_v0  ;;  %v1579_v0 = vld [vmem:[%s2857_s10 + $0x8] sm:$0xff] }
 0x734   : > { %v2104_v22 = vpack.c.bf16 %v1579_v0, %v1578_v21 }
 0x735   : > { %v1549_v14 = vsel %vm501_vm0, %v2703_v13, 0.0 }
 0x736   : > { %1550 = vadd.xlane.f32.xlu0 %v1549_v14  ;;  %2105 = vmatpush3.bf16.msra.mxu1 %v2104_v22 }
 0x737   : > { %2106 = vmatprep.subr.bf16.mxu1 %v2341_v15  ;;  %v1677_v15 = vld [vmem:[%s2859_s12 + $0x70] sm:$0xff] }
 0x738   : > { %v2131_v57 = vpack.c.bf16 %v1678_v56, %v1677_v15 }
 0x73a   : > { %2108 = vmatpush3.bf16.msra.mxu1 %v2107_v25  ;;  %2132 = vmatpush3.bf16.msra.mxu0 %v2131_v57 }
 0x7c3   : > { %v1551_v16 = vpop.xlane.xlu0 %1550 }
 0x7c4   : > { %v1552_v17 = vmul.f32 0.03125, %v1551_v16 }
 0x7c6   : > { %v1553_v18 = vsub.f32 %v2703_v13, %v1552_v17 }
 0x7c8   : > { %v1554_v20 = vmul.f32 %v1553_v18, %v1553_v18 }
 0x7ca   : > { %v1555_v19 = vsel %vm501_vm0, %v1554_v20, 0.0 }
 0x7cb   : > { %1556 = vadd.xlane.f32.xlu1 %v1555_v19 }
 0x858   : > { %v1557_v47 = vpop.xlane.xlu1 %1556 }
 0x859   : > { %v1558_v48 = vmul.f32 0.03125, %v1557_v47 }
 0x85b   : > { %v1559_v49 = vadd.f32 1e-05, %v1558_v48 }
 0x85d   : > { %2224 = vrsqrt.f32 %v1559_v49 }
 0x867   : > { %v2225_v50 = vpop.eup %2224 }
 0x868   : > { %v1561_v52 = vmul.f32 %v2225_v50, %v1553_v18 }
 0x86a   : > { %v1569_v54 = vmul.f32 %v1882_v51, %v1561_v52 }
 0x86c   : > { %v1577_v55 = vadd.f32 %v1883_v53, %v1569_v54 }
 0x86e   : > { %2042 = vmatmul.mubr.msk.f32.vlgmr.msra.gmra.mrb[16].mxu1 %vm501_vm0, %v1577_v55 }
 0x941   : > { %v1658_v59 = vpop.f32.mrb[16].mxu1 }
 0x942   : > { %v1659_v60 = vadd.f32 %v1884_v58, %v1658_v59  ;;  %v2043_v61 = vpop.f32.mrb[17].mxu1 }
 0x944   : > { %v1662_v62 = vmax.f32 %v1659_v60, 0.0 }
 0x946   : > { %2077 = vmatmul.mubr.f32.vlgmr.msra.gmra.mrb[8].mxu0 %v1662_v62 }
 0xa19   : > { %v1752_v1 = vpop.f32.mrb[8].mxu0 }
 0xa1a   : > { %v1753_v2 = vadd.f32 %v1886_v63, %v1752_v1  ;;  %v2078_v3 = vpop.f32.mrb[9].mxu0 }
 0xa1c   : > { %v1756_v4 = vadd.f32 %v1753_v2, %v2703_v13 }
 0xa1e   : > { %1757 = vst.msk [vmem:[%s496_s19] sm:$0xff] %vm501_vm0, %v1756_v4 }
 0xa1f   : > { %2269 = shalt.err (!%p2266_p6)
}
 0xa20   : > { %s2270_s29 = scalar_lea.hbm %s2797_s27, 128  ;;  %s2274_s24 = scalar_lea.hbm %s2881_s20, 256 }
 0xa21   : > { %p2271_p4 = scmp.ne.s32.totalorder %s2797_s27, %s2270_s29  ;;  %p2275_p1 = scmp.lt.u32.totalorder %s2797_s27, %s2881_s20 }
 0xa22   : > { %p2276_p2 = scmp.lt.u32.totalorder %s2274_s24, %s2270_s29  ;;  %p2278_p8 = scmp.lt.u32.totalorder %s2270_s29, %s2797_s27 }
 0xa23   : > { %p2272_p10 = pnand %p2271_p4, %p2882_p9 }
 0xa24   : > { %p2277_p5 = por %p2276_p2, %p2275_p1 }
 0xa25   : > { %p2273_p12 = pneg %p2272_p10 }
 0xa26   : > { %p2279_p11 = por %p2278_p8, %p2277_p5 }
 0xa28   : > { %p2280_p0 = pnand %p2279_p11, %p2273_p12 }
 0xa2a   : > { %2283 = shalt.err (!%p2280_p0)
}
 0xa2b   : > { %2135 = dma.vmem_to_hbm [thread:$0]  (%p2882_p9), %s2799_s21, 128, %s2797_s27, %s1759_s16  }
 0xa2c PF: > { %s2883_s13 = sld [smem:[#allocation9_spill]]  ;;  %p2884_p7 = scmp.ne.s32.totalorder %s2876_s28, 0 }
 0xa2d   : > { %p2885_p13 = scmp.ge.s32.totalorder %s2338_s18, 2 }
 0xa2f   : > { %p2142_p3 = pnand %p2885_p13, %p2884_p7 }
 0xa32   : > { %s1785_s25 = sand.u32 1, %s2883_s13  }
 0xa33   : > { %s1786_s22 = scalar_lea.sflag [#allocation5], %s1785_s25 }
 0xa34   : > { %2313 = dma.done.wait (!%p2142_p3), %s1786_s22, 128  }
 0xa35   : > { %2315 = vsyncadd (!%p2142_p3), %s1786_s22, 4294967168  ;;  %s30_s18 = sadd.s32 1, %s2338_s18   ;;  %s2886_s26 = sld [smem:[#allocation12_spill]] }
 0xa36   : > { %p27_p6 = scmp.ge.s32.totalorder %s30_s18, 4   ;;  %s2887_s16 = sld [smem:[#allocation10_spill]] }
 0xa37   : > { %s2888_s17 = sld [smem:[#allocation11_spill]]  ;;  %s2889_s29 = smov %s2322_s30 }
 0xa38   : > { %s2890_s30 = smov %s2326_s15  ;;  %29 = sbr.rel (!%p27_p6) target bundleno = 9 (0x9), region = 122 }
 0xa3b   : > { %s2891_s15 = smov %s2886_s26 }
 0xa3f   :  { %1791 = vsyncpa [#allocation4], 1 }
 0xa40   :  { %1793 = vsyncpa [#allocation4 + $0x1], 1 }
 0xa41   :  { %1794 = vsyncpa [#allocation5], 1 }
 0xa42   :  { %1796 = vsyncpa [#allocation5 + $0x1], 1 }

</bundles_post_ra>
